<compile_context>
chip_gen: v7x
topology: tpu7x:2x2x1
jax: 0.10.0
libtpu: 0.0.40
codegen_flags: <defaults>
</compile_context>

<pallas_src>
import functools

import jax
import jax.numpy as jnp
from jax.experimental import pallas as pl
from jax.experimental.pallas import tpu as pltpu


def _round_up(x, m):
    return (x + m - 1) // m * m


def _vmem_limit_bytes():
    # v5e/v6e: 128 MiB physical VMEM -> 64 MiB scoped; v7x: 64 MiB -> 32 MiB.
    try:
        cap = int(pltpu.get_tpu_info().vmem_capacity_bytes)
    except Exception:
        cap = 128 * 1024 * 1024
    return min(64 * 1024 * 1024, max(32 * 1024 * 1024, cap // 2))


# ----------------------------------------------------------------------------
# Kernels
# ----------------------------------------------------------------------------
def _proj_kernel(x_ref, at_ref, o_ref, acc_ref):
    """proj = x @ A.T, accumulated over K tiles. Output in compute dtype."""
    k = pl.program_id(1)

    @pl.when(k == 0)
    def _init():
        acc_ref[...] = jnp.zeros_like(acc_ref)

    acc_ref[...] += jnp.dot(x_ref[...], at_ref[...],
                            preferred_element_type=jnp.float32)

    @pl.when(k == pl.num_programs(1) - 1)
    def _finalize():
        o_ref[...] = acc_ref[...].astype(o_ref.dtype)


def _lora_linear_kernel(*refs, use_lora):
    if use_lora:
        x_ref, wt_ref, b_ref, proj_ref, bt_ref, o_ref, acc_ref = refs
    else:
        x_ref, wt_ref, b_ref, o_ref, acc_ref = refs

    k = pl.program_id(2)
    nk = pl.num_programs(2)

    @pl.when(k == 0)
    def _init():
        # Fold bias (and the tiny LoRA epilogue GEMM) into the accumulator
        # init: proj/bt block indices are constant in k, so they stay resident
        # in VMEM and the last k step only does the store.
        init = jnp.broadcast_to(b_ref[...], acc_ref.shape).astype(jnp.float32)
        if use_lora:
            init = init + jnp.dot(proj_ref[...], bt_ref[...],
                                  preferred_element_type=jnp.float32)
        acc_ref[...] = init

    # Dense path: x @ W.T in contracting-dim layout (no in-kernel transpose).
    acc_ref[...] += jnp.dot(x_ref[...], wt_ref[...],
                            preferred_element_type=jnp.float32)

    @pl.when(k == nk - 1)
    def _finalize():
        o_ref[...] = acc_ref[...].astype(o_ref.dtype)


# ----------------------------------------------------------------------------
# Parameter preparation (done once, at parameter-load time)
# ----------------------------------------------------------------------------
def prepare_lora_linear_params(weight, bias, lora_A, lora_B, *, scaling,
                               use_lora, compute_dtype=None, tn=512, tk=512):
    """weight: (N, K), bias: (N,)|None, lora_A: (r, K), lora_B: (N, r).

    Returns a dict of relayouted / padded / cast parameters plus static
    metadata consumed by lora_linear(). Hoisting this out of the forward pass
    avoids re-reading + re-writing the full K x N weight in XLA on every call.
    """
    N, K = weight.shape
    r = lora_A.shape[0]

    if compute_dtype is None:
        # bf16 is MXU-native on all generations; f32 matmul is a slow
        # multi-pass decomposition and doubles weight HBM traffic.
        compute_dtype = jnp.bfloat16 if weight.dtype == jnp.float32 else weight.dtype

    tn = min(tn, _round_up(N, 128))
    tk = min(tk, _round_up(K, 128))
    Np, Kp = _round_up(N, tn), _round_up(K, tk)

    wt = jnp.pad(weight.T.astype(compute_dtype), ((0, Kp - K), (0, Np - N)))
    if bias is None:
        b2 = jnp.zeros((1, Np), jnp.float32)
    else:
        b2 = jnp.pad(bias.astype(jnp.float32).reshape(1, N),
                     ((0, 0), (0, Np - N)))

    params = dict(wt=wt, b2=b2, at=None, bt=None,
                  N=N, K=K, r=r, rp=0, tn=tn, tk=tk, Np=Np, Kp=Kp,
                  use_lora=use_lora, compute_dtype=compute_dtype)

    if use_lora:
        rp = _round_up(r, 128)                        # lane-friendly rank pad
        at = jnp.pad(lora_A.T.astype(compute_dtype),
                     ((0, Kp - K), (0, rp - r)))       # (Kp, rp)
        bt = jnp.pad((scaling * lora_B).T.astype(compute_dtype),
                     ((0, rp - r), (0, Np - N)))       # (rp, Np), scaling folded
        params.update(at=at, bt=bt, rp=rp)
    # TODO(synk): optional fp8 weight storage (v7x) with per-channel scales.
    return params


# ----------------------------------------------------------------------------
# Forward
# ----------------------------------------------------------------------------
def lora_linear(data, params, *, tm=512):
    """data: (..., K). Returns (..., N) in data.dtype."""
    N, K = params["N"], params["K"]
    tn, tk = params["tn"], params["tk"]
    Np, Kp = params["Np"], params["Kp"]
    use_lora = params["use_lora"]
    cd = params["compute_dtype"]

    lead = data.shape[:-1]
    out_dtype = data.dtype
    x = data.reshape(-1, K)
    M = x.shape[0]

    # bf16 packs 16 rows per sublane group -> 16-row tiles avoid masked stores.
    row_mult = 16 if cd == jnp.bfloat16 else 8
    tm = min(tm, _round_up(M, row_mult))
    Mp = _round_up(M, tm)

    xp = jnp.pad(x.astype(cd), ((0, Mp - M), (0, Kp - K)))
    vmem_limit = _vmem_limit_bytes()

    # ---- LoRA down-projection: proj = x @ A.T, one tiny GEMM per M tile ----
    if use_lora:
        rp = params["rp"]
        proj = pl.pallas_call(
            _proj_kernel,
            out_shape=jax.ShapeDtypeStruct((Mp, rp), cd),
            grid_spec=pltpu.PrefetchScalarGridSpec(
                num_scalar_prefetch=0,
                grid=(Mp // tm, Kp // tk),
                in_specs=[pl.BlockSpec((tm, tk), lambda i, k: (i, k)),
                          pl.BlockSpec((tk, rp), lambda i, k: (k, 0))],
                out_specs=pl.BlockSpec((tm, rp), lambda i, k: (i, 0)),
                scratch_shapes=[pltpu.VMEM((tm, rp), jnp.float32)],
            ),
            compiler_params=pltpu.CompilerParams(
                dimension_semantics=("parallel", "arbitrary"),
                vmem_limit_bytes=vmem_limit,
            ),
            cost_estimate=pl.CostEstimate(
                flops=2 * Mp * Kp * rp, transcendentals=0,
                bytes_accessed=(xp.size * xp.dtype.itemsize
                                + params["at"].size * params["at"].dtype.itemsize
                                + Mp * rp * jnp.dtype(cd).itemsize)),
        )(xp, params["at"])

    # ---- Main fused GEMM + bias (+ LoRA epilogue) ----
    in_specs = [
        pl.BlockSpec((tm, tk), lambda i, j, k: (i, k)),    # x tile
        pl.BlockSpec((tk, tn), lambda i, j, k: (k, j)),    # W.T tile
        pl.BlockSpec((1, tn), lambda i, j, k: (0, j)),     # bias tile
    ]
    operands = [xp, params["wt"], params["b2"]]
    flops = 2 * M * K * N
    bytes_accessed = (xp.size * xp.dtype.itemsize
                      + params["wt"].size * params["wt"].dtype.itemsize
                      + params["b2"].size * params["b2"].dtype.itemsize
                      + Mp * Np * jnp.dtype(out_dtype).itemsize)

    if use_lora:
        in_specs += [
            pl.BlockSpec((tm, rp), lambda i, j, k: (i, 0)),   # proj (per M tile)
            pl.BlockSpec((rp, tn), lambda i, j, k: (0, j)),   # scaled B.T tile
        ]
        operands += [proj, params["bt"]]
        flops += 2 * M * K * params["r"] + 2 * M * params["r"] * N
        bytes_accessed += (proj.size * proj.dtype.itemsize
                           + params["bt"].size * params["bt"].dtype.itemsize)

    kernel = functools.partial(_lora_linear_kernel, use_lora=use_lora)

    out = pl.pallas_call(
        kernel,
        out_shape=jax.ShapeDtypeStruct((Mp, Np), out_dtype),
        grid_spec=pltpu.PrefetchScalarGridSpec(
            num_scalar_prefetch=0,
            grid=(Mp // tm, Np // tn, Kp // tk),
            in_specs=in_specs,
            out_specs=pl.BlockSpec((tm, tn), lambda i, j, k: (i, j)),
            scratch_shapes=[pltpu.VMEM((tm, tn), jnp.float32)],
        ),
        compiler_params=pltpu.CompilerParams(
            # proj is precomputed, so j no longer needs to be sequential:
            # both M and N shard across TensorCores on v7x.
            dimension_semantics=("parallel", "parallel", "arbitrary"),
            vmem_limit_bytes=vmem_limit,
        ),
        cost_estimate=pl.CostEstimate(flops=flops, transcendentals=0,
                                      bytes_accessed=bytes_accessed),
    )(*operands)

    out = out[:M, :N]
    return out.reshape(*lead, N)


if __name__ == "__main__":
    # Small shapes consistent with the module: batch=2, seq=8, in=32, out=32, r=4
    batch, seq, in_features, out_features, r = 2, 8, 32, 32, 4
    alpha = 1.0
    scaling = alpha / r

    key = jax.random.PRNGKey(0)
    k_x, k_w, k_b, k_a, k_bB = jax.random.split(key, 5)

    data = jax.random.normal(k_x, (batch, seq, in_features), dtype=jnp.float32)

    bound = 1.0 / (in_features ** 0.5)
    weight = jax.random.uniform(k_w, (out_features, in_features),
                                minval=-bound, maxval=bound, dtype=jnp.float32)
    bias = jax.random.uniform(k_b, (out_features,),
                              minval=-bound, maxval=bound, dtype=jnp.float32)
    lora_A = jax.random.normal(k_a, (r, in_features), dtype=jnp.float32) * 0.01
    # The module inits lora_B to zeros; use small random values here so the
    # fused LoRA path actually contributes and is correctness-checked.
    lora_B = jax.random.normal(k_bB, (out_features, r), dtype=jnp.float32) * 0.01

    ref_lora = data @ weight.T + bias + (data @ lora_A.T) @ lora_B.T * scaling
    ref_plain = data @ weight.T + bias

    # ---- f32 compute path: exact correctness check (tight tolerance) ----
    p_f32 = prepare_lora_linear_params(weight, bias, lora_A, lora_B,
                                       scaling=scaling, use_lora=True,
                                       compute_dtype=jnp.float32)
    out = jax.block_until_ready(lora_linear(data, p_f32))
    assert out.shape == (batch, seq, out_features)
    assert jnp.allclose(out, ref_lora, atol=1e-5, rtol=1e-5), \
        "mismatch (use_lora=True, f32)"

    p_f32_plain = prepare_lora_linear_params(weight, bias, lora_A, lora_B,
                                             scaling=scaling, use_lora=False,
                                             compute_dtype=jnp.float32)
    out2 = jax.block_until_ready(lora_linear(data, p_f32_plain))
    assert jnp.allclose(out2, ref_plain, atol=1e-5, rtol=1e-5), \
        "mismatch (use_lora=False, f32)"

    # ---- default (bf16) compute path: fast MXU path, f32 accumulation ----
    p_bf16 = prepare_lora_linear_params(weight, bias, lora_A, lora_B,
                                        scaling=scaling, use_lora=True)
    out3 = jax.block_until_ready(lora_linear(data, p_bf16))
    assert out3.shape == (batch, seq, out_features)
    assert jnp.allclose(out3, ref_lora, atol=2e-2, rtol=2e-2), \
        "mismatch (use_lora=True, bf16 compute)"

    print("KERNEL_OK")
</pallas_src>

<mosaic_0001>
module attributes {stable_mosaic.version = 11 : i64} {
  func.func @_proj_kernel(%arg0: i32, %arg1: i32, %arg2: memref<16x128xf32, #tpu.memory_space<vmem>>, %arg3: memref<128x128xf32, #tpu.memory_space<vmem>>, %arg4: memref<16x128xf32, #tpu.memory_space<vmem>>, %arg5: memref<16x128xf32, #tpu.memory_space<vmem>>) attributes {dimension_semantics = [#tpu.dimension_semantics<parallel>, #tpu.dimension_semantics<arbitrary>], iteration_bounds = array<i64: 1, 1>, scalar_prefetch = 0 : i64, scratch_operands = 1 : i64, tpu.core_type = #tpu.core_type<tc>, window_params = [{transform_indices = @transform_0, window_bounds = array<i64: 16, 128>}, {transform_indices = @transform_1, window_bounds = array<i64: 128, 128>}, {transform_indices = @transform_2, window_bounds = array<i64: 16, 128>}]} {
    %c0_i32 = arith.constant 0 : i32
    %0 = arith.cmpi eq, %arg1, %c0_i32 : i32
    %1 = arith.extui %0 : i1 to i32
    %c0_i32_0 = arith.constant 0 : i32
    %2 = arith.cmpi ne, %1, %c0_i32_0 : i32
    scf.if %2 {
      %cst_10 = arith.constant 0.000000e+00 : f32
      %12 = vector.broadcast %cst_10 : f32 to vector<16x128xf32>
      %c0_11 = arith.constant 0 : index
      %c0_12 = arith.constant 0 : index
      %13 = vector.load %arg5[%c0_11, %c0_12] : memref<16x128xf32, #tpu.memory_space<vmem>>, vector<16x128xf32>
      tpu.vector_store %arg5[%c0_11, %c0_12], %12 {strides = array<i32>} : memref<16x128xf32, #tpu.memory_space<vmem>>, vector<16x128xf32>,
    } else {
    }
    %c0 = arith.constant 0 : index
    %c0_1 = arith.constant 0 : index
    %3 = vector.load %arg5[%c0, %c0_1] : memref<16x128xf32, #tpu.memory_space<vmem>>, vector<16x128xf32>
    %c0_2 = arith.constant 0 : index
    %c0_3 = arith.constant 0 : index
    %4 = vector.load %arg2[%c0_2, %c0_3] : memref<16x128xf32, #tpu.memory_space<vmem>>, vector<16x128xf32>
    %c0_4 = arith.constant 0 : index
    %c0_5 = arith.constant 0 : index
    %5 = vector.load %arg3[%c0_4, %c0_5] : memref<128x128xf32, #tpu.memory_space<vmem>>, vector<128x128xf32>
    %cst = arith.constant dense<0.000000e+00> : vector<16x128xf32>
    %6 = tpu.matmul %4, %5, %cst {dimension_numbers = #tpu.dot_dimension_numbers<[1], [0], [0], [1], [0, 0, 1, 1], [], []>} : vector<16x128xf32>, vector<128x128xf32>, vector<16x128xf32> -> vector<16x128xf32>
    %7 = arith.addf %3, %6 : vector<16x128xf32>
    %c0_6 = arith.constant 0 : index
    %c0_7 = arith.constant 0 : index
    %8 = vector.load %arg5[%c0_6, %c0_7] : memref<16x128xf32, #tpu.memory_space<vmem>>, vector<16x128xf32>
    tpu.vector_store %arg5[%c0_6, %c0_7], %7 {strides = array<i32>} : memref<16x128xf32, #tpu.memory_space<vmem>>, vector<16x128xf32>,
    %c0_i32_8 = arith.constant 0 : i32
    %9 = arith.cmpi eq, %arg1, %c0_i32_8 : i32
    %10 = arith.extui %9 : i1 to i32
    %c0_i32_9 = arith.constant 0 : i32
    %11 = arith.cmpi ne, %10, %c0_i32_9 : i32
    scf.if %11 {
      %c0_10 = arith.constant 0 : index
      %c0_11 = arith.constant 0 : index
      %12 = vector.load %arg5[%c0_10, %c0_11] : memref<16x128xf32, #tpu.memory_space<vmem>>, vector<16x128xf32>
      %c0_12 = arith.constant 0 : index
      %c0_13 = arith.constant 0 : index
      %13 = vector.load %arg4[%c0_12, %c0_13] : memref<16x128xf32, #tpu.memory_space<vmem>>, vector<16x128xf32>
      tpu.vector_store %arg4[%c0_12, %c0_13], %12 {strides = array<i32>} : memref<16x128xf32, #tpu.memory_space<vmem>>, vector<16x128xf32>,
    } else {
    }
    return
  }
  func.func @transform_0(%arg0: i32, %arg1: i32) -> (i32, i32) {
    %c0_i32 = arith.constant 0 : i32
    return %arg0, %arg1 : i32, i32
  }
  func.func @transform_1(%arg0: i32, %arg1: i32) -> (i32, i32) {
    %c0_i32 = arith.constant 0 : i32
    %c0_i32_0 = arith.constant 0 : i32
    return %arg1, %c0_i32 : i32, i32
  }
  func.func @transform_2(%arg0: i32, %arg1: i32) -> (i32, i32) {
    %c0_i32 = arith.constant 0 : i32
    %c0_i32_0 = arith.constant 0 : i32
    return %arg0, %c0_i32 : i32, i32
  }
}

</mosaic_0001>

<bundles_post_ra>
// kernel: tpu_custom_call.1
= control target key start
LH: loop header
LB: loop body
LE: loop exit
PB: predicated region body
PF: predicated region fallthrough
CT: control target
= control target key end

     0   :  { %7 = vsyncpa [#allocation4], 0  ;;  %s397_s0 = inlined_call_operand.hbm [shape: f32[16,128], index: 0, kind: input, shape index: {}]   ;;  %s398_s1 = inlined_call_operand.hbm [shape: f32[128,128], index: 1, kind: input, shape index: {}]   ;;  %s399_s2 = inlined_call_operand.hbm [shape: f32[16,128], index: 2, kind: output, shape index: {}]  }
   0x1   :  { %8 = vsyncpa [#allocation7], 0 }
   0x2   :  { %9 = vsyncpa [#allocation5], 0  ;;  %s332_s9 = smov [#allocation3]   ;;  %s260_s13 = scalar_lea.hbm %s397_s0, 256 }
   0x3   :  { %s15_s10 = sshll.u32 %s332_s9, 4  ;;  %p261_p0 = scmp.ne.s32.totalorder %s397_s0, %s260_s13  ;;  %s16_s10 = int_to_ptr.vmem [resolvable:$true] %s15_s10 }
   0x4   :  { %p264_p1 = scmp.lt.u32.totalorder %s260_s13, %s397_s0 }
   0x6   :  { %p266_p2 = pnand %p264_p1, %p261_p0 }
   0x8   :  { %269 = shalt.err (!%p266_p2)
}
   0x9   :  { %s270_s18 = scalar_lea.vmem %s16_s10, 256  ;;  %p275_p4 = scmp.lt.s32.totalorder %s16_s10, %s16_s10 }
   0xa   :  { %p271_p3 = scmp.ne.s32.totalorder %s16_s10, %s270_s18  ;;  %p276_p5 = scmp.lt.s32.totalorder %s270_s18, %s270_s18 }
   0xc   :  { %p277_p6 = por %p276_p5, %p275_p4 }
   0xe   :  { %p278_p7 = pnand %p277_p6, %p271_p3 }
  0x10   :  { %281 = shalt.err (!%p278_p7)
}
  0x11   :  { %s333_s19 = smov 128   ;;  %s334_s20 = smov 8  }
  0x12   :  { %21 = dma.hbm_to_vmem [thread:$0]  %s397_s0, 256, %s16_s10, [#allocation4], %s333_s19, %s333_s19, %s334_s20  }
  0x13   :  { %s335_s23 = smov [#allocation6]   ;;  %s282_s27 = scalar_lea.hbm %s398_s1, 2048 }
  0x14   :  { %s27_s24 = sshll.u32 %s335_s23, 4  ;;  %p283_p8 = scmp.ne.s32.totalorder %s398_s1, %s282_s27  ;;  %s28_s24 = int_to_ptr.vmem [resolvable:$true] %s27_s24 }
  0x15   :  { %p286_p9 = scmp.lt.u32.totalorder %s282_s27, %s398_s1 }
  0x17   :  { %p288_p10 = pnand %p286_p9, %p283_p8 }
  0x19   :  { %291 = shalt.err (!%p288_p10)
}
  0x1a   :  { %s292_s4 = scalar_lea.vmem %s28_s24, 2048  ;;  %p297_p12 = scmp.lt.s32.totalorder %s28_s24, %s28_s24 }
  0x1b   :  { %p293_p11 = scmp.ne.s32.totalorder %s28_s24, %s292_s4  ;;  %p298_p13 = scmp.lt.s32.totalorder %s292_s4, %s292_s4 }
  0x1d   :  { %p299_p0 = por %p298_p13, %p297_p12 }
  0x1f   :  { %p300_p1 = pnand %p299_p0, %p293_p11 }
  0x21   :  { %303 = shalt.err (!%p300_p1)
}
  0x22   :  { %33 = dma.hbm_to_vmem [thread:$0]  %s398_s1, 2048, %s28_s24, [#allocation7], %s333_s19, %s333_s19, %s334_s20  }
  0x23   :  { %326 = dma.done.wait [#allocation4], 256  }
  0x24   :  { %327 = vsyncadd [#allocation4], 4294967040 }
  0x25   :  { %328 = dma.done.wait [#allocation7], 2048  }
  0x26   :  { %329 = vsyncadd [#allocation7], 4294965248  ;;  %v50_v0 = vld [vmem:[#allocation6] sm:$0xff]  ;;  %v51_v1 = vld [vmem:[#allocation6 + $0x8] sm:$0xff]  ;;  %s336_s1 = smov [#allocation8]  }
  0x27   :  { %v52_v2 = vld [vmem:[#allocation6 + $0x10] sm:$0xff]  ;;  %v223_v3 = vpack.c.bf16 %v51_v1, %v50_v0  ;;  %v53_v4 = vld [vmem:[#allocation6 + $0x18] sm:$0xff]  ;;  %v54_v6 = vld [vmem:[#allocation6 + $0x20] sm:$0xff]  ;;  %s157_s6 = sshll.u32 %s336_s1, 4  ;;  %s158_s6 = int_to_ptr.vmem [resolvable:$true] %s157_s6 }
  0x28   :  { %v227_v5 = vpack.c.bf16 %v53_v4, %v52_v2  ;;  %v55_v7 = vld [vmem:[#allocation6 + $0x28] sm:$0xff]  ;;  %v48_v9 = vld [vmem:[#allocation3] sm:$0xff]  ;;  %v57_v11 = vld [vmem:[#allocation6 + $0x38] sm:$0xff]  ;;  %s304_s7 = scalar_lea.vmem %s158_s6, 256  ;;  %p309_p3 = scmp.lt.s32.totalorder %s158_s6, %s158_s6 }
  0x29   :  { %224 = vmatprep.subr.bf16.mxu0 %v223_v3  ;;  %v231_v8 = vpack.c.bf16 %v55_v7, %v54_v6  ;;  %v56_v10 = vld [vmem:[#allocation6 + $0x30] sm:$0xff]  ;;  %220 = vmatprep.mubr.f32.mxu0 %v48_v9  ;;  %v58_v13 = vld [vmem:[#allocation6 + $0x40] sm:$0xff]  ;;  %v59_v14 = vld [vmem:[#allocation6 + $0x48] sm:$0xff]  ;;  %p305_p2 = scmp.ne.s32.totalorder %s158_s6, %s304_s7  ;;  %p310_p4 = scmp.lt.s32.totalorder %s304_s7, %s304_s7 }
  0x2a   :  { %226 = vmatpush3.bf16.msra.mxu0 %v223_v3  ;;  %v235_v12 = vpack.c.bf16 %v57_v11, %v56_v10  ;;  %v239_v15 = vpack.c.bf16 %v59_v14, %v58_v13  ;;  %v60_v16 = vld [vmem:[#allocation6 + $0x50] sm:$0xff]  ;;  %v61_v17 = vld [vmem:[#allocation6 + $0x58] sm:$0xff]  ;;  %v62_v19 = vld [vmem:[#allocation6 + $0x60] sm:$0xff] }
  0x2b   :  { %228 = vmatprep.subr.bf16.mxu0 %v227_v5  ;;  %v243_v18 = vpack.c.bf16 %v61_v17, %v60_v16  ;;  %v63_v20 = vld [vmem:[#allocation6 + $0x68] sm:$0xff]  ;;  %v64_v22 = vld [vmem:[#allocation6 + $0x70] sm:$0xff]  ;;  %v65_v23 = vld [vmem:[#allocation6 + $0x78] sm:$0xff]  ;;  %p311_p5 = por %p310_p4, %p309_p3 }
  0x2c   :  { %v247_v21 = vpack.c.bf16 %v63_v20, %v62_v19  ;;  %v251_v24 = vpack.c.bf16 %v65_v23, %v64_v22  ;;  %v49_v25 = vld [vmem:[#allocation3 + $0x8] sm:$0xff] }
  0x2d   :  { %p312_p6 = pnand %p311_p5, %p305_p2 }
  0x2e   :  { %230 = vmatpush3.bf16.msra.mxu0 %v227_v5 }
  0x2f   :  { %232 = vmatprep.subr.bf16.mxu0 %v231_v8 }
  0x32   :  { %234 = vmatpush3.bf16.msra.mxu0 %v231_v8 }
  0x33   :  { %236 = vmatprep.subr.bf16.mxu0 %v235_v12 }
  0x36   :  { %238 = vmatpush3.bf16.msra.mxu0 %v235_v12 }
  0x37   :  { %240 = vmatprep.subr.bf16.mxu0 %v239_v15 }
  0x3a   :  { %242 = vmatpush3.bf16.msra.mxu0 %v239_v15 }
  0x3b   :  { %244 = vmatprep.subr.bf16.mxu0 %v243_v18 }
  0x3e   :  { %246 = vmatpush3.bf16.msra.mxu0 %v243_v18 }
  0x3f   :  { %248 = vmatprep.subr.bf16.mxu0 %v247_v21 }
  0x42   :  { %250 = vmatpush3.bf16.msra.mxu0 %v247_v21 }
  0x43   :  { %252 = vmatprep.subr.bf16.mxu0 %v251_v24 }
  0x46   :  { %254 = vmatpush3.bf16.msra.mxu0 %v251_v24 }
  0x49   :  { %221 = vmatmul.mubr.f32.vlgmr.msra.gmra.mrb[0].mxu0 %v49_v25 }
 0x11c   :  { %v222_v26 = vpop.f32.mrb[0].mxu0 }
 0x11d   :  { %151 = vst [vmem:[#allocation8 + $0x8] sm:$0xff] %v222_v26  ;;  %v132_v27 = vpop.f32.mrb[1].mxu0 }
 0x11e   :  { %150 = vst [vmem:[#allocation8] sm:$0xff] %v132_v27 }
 0x11f   :  { %315 = shalt.err (!%p312_p6)
}
 0x120   :  { %s316_s10 = scalar_lea.hbm %s399_s2, 256 }
 0x121   :  { %p317_p7 = scmp.ne.s32.totalorder %s399_s2, %s316_s10  ;;  %p320_p8 = scmp.lt.u32.totalorder %s316_s10, %s399_s2 }
 0x123   :  { %p322_p9 = pnand %p320_p8, %p317_p7 }
 0x125   :  { %325 = shalt.err (!%p322_p9)
}
 0x126   :  { %163 = dma.vmem_to_hbm [thread:$0]  %s158_s6, 256, %s399_s2, [#allocation5], %s333_s19, %s333_s19, %s334_s20  }
 0x127   :  { %330 = dma.done.wait [#allocation5], 256  }
 0x128   :  { %331 = vsyncadd [#allocation5], 4294967040 }
 0x129   :  { %167 = vsyncpa [#allocation4], 1 }
 0x12a   :  { %168 = vsyncpa [#allocation7], 1 }
 0x12b   :  { %169 = vsyncpa [#allocation5], 1 }

</bundles_post_ra>
